<compile_context>
chip_gen: v7x
topology: tpu7x:2x2x1
jax: 0.10.0
libtpu: 0.0.40
codegen_flags: <defaults>
</compile_context>

<pallas_src>
import functools

import jax
import jax.numpy as jnp
from jax import lax
from jax.experimental import pallas as pl
from jax.experimental.pallas import tpu as pltpu

_LANE = 128


def _round_up(x, m):
    return ((x + m - 1) // m) * m


def _sublane_granule(dtype):
    """Packed-sublane granule: 8 rows for f32, 16 for bf16, 32 for int8/fp8."""
    return max(8, 32 // jnp.dtype(dtype).itemsize)


def _default_splits():
    """Leading 'parallel' grid-axis size: 2 only on chips with 2 TensorCores."""
    try:
        kind = jax.devices()[0].device_kind.lower()
    except Exception:
        return 1
    if "v7" in kind or "v4" in kind or "v5p" in kind:
        return 2
    return 1


def _plan_tiles(rows_needed, granule, bytes_per_row, splits,
                target_block_bytes=4 * 1024 * 1024):
    """Pick (tile_rows, tiles_needed, tiles_per_split) for the rows axis.

    target_block_bytes covers BOTH input blocks (pred + target) for one grid
    step; with double-buffering the steady-state input VMEM footprint is about
    2 * target_block_bytes (default ~8 MiB).
    """
    tr = (target_block_bytes // max(bytes_per_row, 1)) // granule * granule
    tr = max(granule, tr)
    tr = min(tr, _round_up(rows_needed, granule))
    tiles_needed = pl.cdiv(rows_needed, tr)
    tiles_total = _round_up(max(tiles_needed, splits), splits)
    return tr, tiles_needed, tiles_total // splits


def _bce_dice_partial_kernel(pred_ref, target_ref, acc_ref, *,
                             tile_rows, tiles_per_split, n_valid):
    """Accumulate per-batch partial sums over one (B, tile_rows, 128) tile.

    acc_ref block is (1, 3, B, 128) f32, revisited across the reduction axis:
      acc[0, 0] += sum((t - p)^2), acc[0, 1] += sum(p * t), acc[0, 2] += sum(p + t)
    """
    s = pl.program_id(0)
    j = pl.program_id(1)

    @pl.when(j == 0)
    def _init():
        acc_ref[...] = jnp.zeros_like(acc_ref)

    # Unclamped global tile index: tiles past the data (grid rounding) and the
    # ragged tail are neutralized by the masked branch below.
    tile = s * tiles_per_split + j
    tile_start = tile * (tile_rows * _LANE)       # flat element offset per batch

    def _accumulate(p, t):
        err = t - p
        acc_ref[0, 0] += jnp.sum(err * err, axis=1)   # (B, 128) lane-dense f32
        acc_ref[0, 1] += jnp.sum(p * t, axis=1)
        acc_ref[0, 2] += jnp.sum(p + t, axis=1)

    fully_valid = tile_start + tile_rows * _LANE <= n_valid

    @pl.when(fully_valid)
    def _fast():
        # Common path: no masking -> minimal VALU ops/elem (stays HBM-bound).
        _accumulate(pred_ref[...].astype(jnp.float32),
                    target_ref[...].astype(jnp.float32))

    @pl.when(jnp.logical_not(fully_valid))
    def _masked():
        # Boundary / duplicated / out-of-range tile: zero every element whose
        # flat index is >= n_valid before accumulating.  This covers clipped
        # (garbage) DMA tails, lane padding, and extra target channels.
        p = pred_ref[...].astype(jnp.float32)
        t = target_ref[...].astype(jnp.float32)
        row_ids = lax.broadcasted_iota(jnp.int32, (tile_rows, _LANE), 0)
        lane_ids = lax.broadcasted_iota(jnp.int32, (tile_rows, _LANE), 1)
        idx = tile_start + row_ids * _LANE + lane_ids
        mask = (idx < n_valid)[None]              # (1, tile_rows, 128)
        _accumulate(jnp.where(mask, p, 0.0), jnp.where(mask, t, 0.0))


def bce_dice_loss(pred, target, wb=1.0, wd=1.0):
    """pred, target: NCHW float arrays (f32 or bf16). Returns scalar f32 loss."""
    b = pred.shape[0]
    n = pred.shape[1] * pred.shape[2] * pred.shape[3]   # valid elements / batch

    pred_flat = pred.reshape(b, n)                      # free reshape
    if pred.shape[1] == 1 and target.shape[1] != 1:
        # PyTorch: target = target[:, 0:1].  In NCHW, channel 0 is the
        # contiguous prefix of each batch row, so keep the FULL target as a
        # free view and let the kernel mask everything past n elements.
        tgt_flat = target.reshape(b, -1)
        if tgt_flat.shape[1] % _LANE != 0:
            # Rare fallback: lane-unaligned full width -> materialize the slice.
            tgt_flat = tgt_flat[:, :n]
    else:
        tgt_flat = target.reshape(b, n)

    def _rows128(flat):
        w = flat.shape[1]
        if w % _LANE:
            # Only when the flat width is not a multiple of 128 (the
            # (B, rows, 128) view needs it); pads at most 127 elements/row.
            flat = jnp.pad(flat, ((0, 0), (0, _LANE - w % _LANE)))
        return flat.reshape(b, -1, _LANE)

    pred3 = _rows128(pred_flat)
    tgt3 = _rows128(tgt_flat)

    rows_needed = pl.cdiv(n, _LANE)
    granule = max(_sublane_granule(pred.dtype), _sublane_granule(target.dtype))
    bytes_per_row = b * _LANE * (jnp.dtype(pred.dtype).itemsize +
                                 jnp.dtype(target.dtype).itemsize)
    splits = _default_splits()
    tile_rows, tiles_needed, tiles_per_split = _plan_tiles(
        rows_needed, granule, bytes_per_row, splits)

    def in_map(s, j):
        # Clamp so no block is issued entirely past the data (the kernel masks
        # a duplicated tile down to a zero contribution).
        tile = s * tiles_per_split + j
        return (0, jnp.minimum(tile, tiles_needed - 1), 0)

    kernel = functools.partial(
        _bce_dice_partial_kernel,
        tile_rows=tile_rows, tiles_per_split=tiles_per_split, n_valid=n)

    acc = pl.pallas_call(
        kernel,
        out_shape=jax.ShapeDtypeStruct((splits, 3, b, _LANE), jnp.float32),
        grid_spec=pltpu.PrefetchScalarGridSpec(
            num_scalar_prefetch=0,
            grid=(splits, tiles_per_split),
            in_specs=[
                pl.BlockSpec((b, tile_rows, _LANE), in_map),
                pl.BlockSpec((b, tile_rows, _LANE), in_map),
            ],
            out_specs=pl.BlockSpec((1, 3, b, _LANE), lambda s, j: (s, 0, 0, 0)),
        ),
        compiler_params=pltpu.CompilerParams(
            dimension_semantics=("parallel", "arbitrary"),
            vmem_limit_bytes=32 * 1024 * 1024,
        ),
    )(pred3, tgt3)

    # Tiny epilogue in plain JAX; changing wb/wd never triggers a recompile.
    sums = jnp.sum(acc, axis=(0, 3))     # (3, B)
    sq_sum = jnp.sum(sums[0])            # scalar
    inter = sums[1]                      # (B,)
    pt_sum = sums[2]                     # (B,)  == sum(p) + sum(t)

    bce = 10000.0 * sq_sum / (b * n)     # mean over the TRUE element count
    smooth = 1.0
    dice_score = (2.0 * inter + smooth) / (pt_sum + smooth)
    dice_loss = 1.0 - jnp.sum(dice_score) / b
    return (wd * dice_loss + wb * bce).astype(jnp.float32)


def _reference(pred, target, wb=1.0, wd=1.0):
    # Pure-JAX reference mirroring the PyTorch module, for a sanity check.
    if pred.shape[1] == 1:
        target = target[:, 0:1, :, :]
    err = target - pred
    bce = 10000.0 * jnp.mean(err ** 2)
    b = pred.shape[0]
    p = pred.reshape(b, -1)
    t = target.reshape(b, -1)
    inter = jnp.sum(p * t, axis=1)
    dice_score = (2.0 * inter + 1.0) / (jnp.sum(p, axis=1) + jnp.sum(t, axis=1) + 1.0)
    dice = 1.0 - jnp.sum(dice_score) / b
    return wd * dice + wb * bce


if __name__ == "__main__":
    key = jax.random.PRNGKey(0)
    k1, k2, k3, k4 = jax.random.split(key, 4)

    # Case 1: single-channel pred vs 4-channel target (PyTorch channel-slice
    # path, handled via masking with NO copy of target), f32.
    pred = jax.nn.sigmoid(jax.random.normal(k1, (2, 1, 16, 16), dtype=jnp.float32))
    target = (jax.random.uniform(k2, (2, 4, 16, 16)) > 0.5).astype(jnp.float32)
    loss = jax.block_until_ready(bce_dice_loss(pred, target, wb=1.0, wd=1.0))
    ref = _reference(pred, target, wb=1.0, wd=1.0)
    assert jnp.allclose(loss, ref, rtol=1e-4, atol=1e-4), (loss, ref)

    # Case 2: bf16 inputs stay bf16 in HBM (cast happens inside the kernel).
    pred_bf = pred.astype(jnp.bfloat16)
    target_bf = target.astype(jnp.bfloat16)
    loss_bf = jax.block_until_ready(bce_dice_loss(pred_bf, target_bf))
    ref_bf = _reference(pred_bf.astype(jnp.float32), target_bf.astype(jnp.float32))
    assert jnp.allclose(loss_bf, ref_bf, rtol=1e-3, atol=1e-3), (loss_bf, ref_bf)

    # Case 3: feature count not a multiple of 128 (exercises the lane-pad
    # fallback plus in-kernel tail masking), multi-channel pred (no slice).
    pred3 = jax.nn.sigmoid(jax.random.normal(k3, (2, 3, 10, 10), dtype=jnp.float32))
    target3 = (jax.random.uniform(k4, (2, 3, 10, 10)) > 0.5).astype(jnp.float32)
    loss3 = jax.block_until_ready(bce_dice_loss(pred3, target3, wb=0.5, wd=2.0))
    ref3 = _reference(pred3, target3, wb=0.5, wd=2.0)
    assert jnp.allclose(loss3, ref3, rtol=1e-4, atol=1e-4), (loss3, ref3)

    # Case 4: single-channel pred + lane-unaligned multi-channel target
    # (exercises the rare slice fallback path).
    pred4 = jax.nn.sigmoid(jax.random.normal(k3, (2, 1, 10, 10), dtype=jnp.float32))
    target4 = (jax.random.uniform(k4, (2, 3, 10, 10)) > 0.5).astype(jnp.float32)
    loss4 = jax.block_until_ready(bce_dice_loss(pred4, target4))
    ref4 = _reference(pred4, target4)
    assert jnp.allclose(loss4, ref4, rtol=1e-4, atol=1e-4), (loss4, ref4)

    print("KERNEL_OK")
</pallas_src>

<mosaic_0001>
module attributes {stable_mosaic.version = 11 : i64} {
  func.func @_bce_dice_partial_kernel(%arg0: i32, %arg1: i32, %arg2: memref<2x8x128xf32, #tpu.memory_space<vmem>>, %arg3: memref<2x8x128xf32, #tpu.memory_space<vmem>>, %arg4: memref<1x3x2x128xf32, #tpu.memory_space<vmem>>) attributes {dimension_semantics = [#tpu.dimension_semantics<parallel>, #tpu.dimension_semantics<arbitrary>], iteration_bounds = array<i64: 1, 1>, scalar_prefetch = 0 : i64, scratch_operands = 0 : i64, tpu.core_type = #tpu.core_type<tc>, window_params = [{transform_indices = @transform_0, window_bounds = array<i64: 2, 8, 128>}, {transform_indices = @transform_1, window_bounds = array<i64: 2, 8, 128>}, {transform_indices = @transform_2, window_bounds = array<i64: 1, 3, 2, 128>}]} {
    %c0_i32 = arith.constant 0 : i32
    %0 = arith.cmpi eq, %arg1, %c0_i32 : i32
    %1 = arith.extui %0 : i1 to i32
    %c0_i32_0 = arith.constant 0 : i32
    %2 = arith.cmpi ne, %1, %c0_i32_0 : i32
    scf.if %2 {
      %cst = arith.constant 0.000000e+00 : f32
      %13 = vector.broadcast %cst : f32 to vector<1x3x2x128xf32>
      %c0 = arith.constant 0 : index
      %c0_4 = arith.constant 0 : index
      %c0_5 = arith.constant 0 : index
      %c0_6 = arith.constant 0 : index
      %14 = vector.load %arg4[%c0, %c0_4, %c0_5, %c0_6] : memref<1x3x2x128xf32, #tpu.memory_space<vmem>>, vector<1x3x2x128xf32>
      tpu.vector_store %arg4[%c0, %c0_4, %c0_5, %c0_6], %13 {strides = array<i32>} : memref<1x3x2x128xf32, #tpu.memory_space<vmem>>, vector<1x3x2x128xf32>,
    } else {
    }
    %c1_i32 = arith.constant 1 : i32
    %3 = arith.muli %arg0, %c1_i32 : i32
    %4 = arith.addi %3, %arg1 : i32
    %c1024_i32 = arith.constant 1024 : i32
    %5 = arith.muli %4, %c1024_i32 : i32
    %c1024_i32_1 = arith.constant 1024 : i32
    %6 = arith.addi %5, %c1024_i32_1 : i32
    %c256_i32 = arith.constant 256 : i32
    %7 = arith.cmpi sle, %6, %c256_i32 : i32
    %8 = arith.extui %7 : i1 to i32
    %c0_i32_2 = arith.constant 0 : i32
    %9 = arith.cmpi ne, %8, %c0_i32_2 : i32
    scf.if %9 {
      %c0 = arith.constant 0 : index
      %c0_4 = arith.constant 0 : index
      %c0_5 = arith.constant 0 : index
      %13 = vector.load %arg2[%c0, %c0_4, %c0_5] : memref<2x8x128xf32, #tpu.memory_space<vmem>>, vector<2x8x128xf32>
      %c0_6 = arith.constant 0 : index
      %c0_7 = arith.constant 0 : index
      %c0_8 = arith.constant 0 : index
      %14 = vector.load %arg3[%c0_6, %c0_7, %c0_8] : memref<2x8x128xf32, #tpu.memory_space<vmem>>, vector<2x8x128xf32>
      %15 = arith.subf %14, %13 : vector<2x8x128xf32>
      %c0_9 = arith.constant 0 : index
      %c0_10 = arith.constant 0 : index
      %c0_11 = arith.constant 0 : index
      %c0_12 = arith.constant 0 : index
      %16 = vector.load %arg4[%c0_9, %c0_10, %c0_11, %c0_12] : memref<1x3x2x128xf32, #tpu.memory_space<vmem>>, vector<1x1x2x128xf32>
      %17 = vector.shape_cast %16 : vector<1x1x2x128xf32> to vector<2x128xf32>
      %18 = arith.mulf %15, %15 : vector<2x8x128xf32>
      %cst = arith.constant dense<0.000000e+00> : vector<2x128xf32>
      %19 = vector.multi_reduction <add>, %18, %cst [1] : vector<2x8x128xf32> to vector<2x128xf32>
      %20 = arith.addf %17, %19 : vector<2x128xf32>
      %c0_13 = arith.constant 0 : index
      %c0_14 = arith.constant 0 : index
      %c0_15 = arith.constant 0 : index
      %c0_16 = arith.constant 0 : index
      %21 = vector.load %arg4[%c0_13, %c0_14, %c0_15, %c0_16] : memref<1x3x2x128xf32, #tpu.memory_space<vmem>>, vector<1x1x2x128xf32>
      %22 = vector.shape_cast %21 : vector<1x1x2x128xf32> to vector<2x128xf32>
      %23 = vector.shape_cast %20 : vector<2x128xf32> to vector<1x1x2x128xf32>
      tpu.vector_store %arg4[%c0_13, %c0_14, %c0_15, %c0_16], %23 {strides = array<i32>} : memref<1x3x2x128xf32, #tpu.memory_space<vmem>>, vector<1x1x2x128xf32>,
      %c0_17 = arith.constant 0 : index
      %c1 = arith.constant 1 : index
      %c0_18 = arith.constant 0 : index
      %c0_19 = arith.constant 0 : index
      %24 = vector.load %arg4[%c0_17, %c1, %c0_18, %c0_19] : memref<1x3x2x128xf32, #tpu.memory_space<vmem>>, vector<1x1x2x128xf32>
      %25 = vector.shape_cast %24 : vector<1x1x2x128xf32> to vector<2x128xf32>
      %26 = arith.mulf %13, %14 : vector<2x8x128xf32>
      %cst_20 = arith.constant dense<0.000000e+00> : vector<2x128xf32>
      %27 = vector.multi_reduction <add>, %26, %cst_20 [1] : vector<2x8x128xf32> to vector<2x128xf32>
      %28 = arith.addf %25, %27 : vector<2x128xf32>
      %c0_21 = arith.constant 0 : index
      %c1_22 = arith.constant 1 : index
      %c0_23 = arith.constant 0 : index
      %c0_24 = arith.constant 0 : index
      %29 = vector.load %arg4[%c0_21, %c1_22, %c0_23, %c0_24] : memref<1x3x2x128xf32, #tpu.memory_space<vmem>>, vector<1x1x2x128xf32>
      %30 = vector.shape_cast %29 : vector<1x1x2x128xf32> to vector<2x128xf32>
      %31 = vector.shape_cast %28 : vector<2x128xf32> to vector<1x1x2x128xf32>
      tpu.vector_store %arg4[%c0_21, %c1_22, %c0_23, %c0_24], %31 {strides = array<i32>} : memref<1x3x2x128xf32, #tpu.memory_space<vmem>>, vector<1x1x2x128xf32>,
      %c0_25 = arith.constant 0 : index
      %c2 = arith.constant 2 : index
      %c0_26 = arith.constant 0 : index
      %c0_27 = arith.constant 0 : index
      %32 = vector.load %arg4[%c0_25, %c2, %c0_26, %c0_27] : memref<1x3x2x128xf32, #tpu.memory_space<vmem>>, vector<1x1x2x128xf32>
      %33 = vector.shape_cast %32 : vector<1x1x2x128xf32> to vector<2x128xf32>
      %34 = arith.addf %13, %14 : vector<2x8x128xf32>
      %cst_28 = arith.constant dense<0.000000e+00> : vector<2x128xf32>
      %35 = vector.multi_reduction <add>, %34, %cst_28 [1] : vector<2x8x128xf32> to vector<2x128xf32>
      %36 = arith.addf %33, %35 : vector<2x128xf32>
      %c0_29 = arith.constant 0 : index
      %c2_30 = arith.constant 2 : index
      %c0_31 = arith.constant 0 : index
      %c0_32 = arith.constant 0 : index
      %37 = vector.load %arg4[%c0_29, %c2_30, %c0_31, %c0_32] : memref<1x3x2x128xf32, #tpu.memory_space<vmem>>, vector<1x1x2x128xf32>
      %38 = vector.shape_cast %37 : vector<1x1x2x128xf32> to vector<2x128xf32>
      %39 = vector.shape_cast %36 : vector<2x128xf32> to vector<1x1x2x128xf32>
      tpu.vector_store %arg4[%c0_29, %c2_30, %c0_31, %c0_32], %39 {strides = array<i32>} : memref<1x3x2x128xf32, #tpu.memory_space<vmem>>, vector<1x1x2x128xf32>,
    } else {
    }
    %true = arith.constant true
    %10 = arith.xori %7, %true : i1
    %11 = arith.extui %10 : i1 to i32
    %c0_i32_3 = arith.constant 0 : i32
    %12 = arith.cmpi ne, %11, %c0_i32_3 : i32
    scf.if %12 {
      %c0 = arith.constant 0 : index
      %c0_4 = arith.constant 0 : index
      %c0_5 = arith.constant 0 : index
      %13 = vector.load %arg2[%c0, %c0_4, %c0_5] : memref<2x8x128xf32, #tpu.memory_space<vmem>>, vector<2x8x128xf32>
      %c0_6 = arith.constant 0 : index
      %c0_7 = arith.constant 0 : index
      %c0_8 = arith.constant 0 : index
      %14 = vector.load %arg3[%c0_6, %c0_7, %c0_8] : memref<2x8x128xf32, #tpu.memory_space<vmem>>, vector<2x8x128xf32>
      %15 = tpu.iota {dimensions = array<i32: 0>} : vector<8x128xi32>
      %16 = tpu.iota {dimensions = array<i32: 1>} : vector<8x128xi32>
      %c128_i32 = arith.constant 128 : i32
      %17 = vector.broadcast %c128_i32 : i32 to vector<8x128xi32>
      %18 = arith.muli %15, %17 : vector<8x128xi32>
      %19 = vector.broadcast %5 : i32 to vector<8x128xi32>
      %20 = arith.addi %19, %18 : vector<8x128xi32>
      %21 = arith.addi %20, %16 : vector<8x128xi32>
      %c256_i32_9 = arith.constant 256 : i32
      %22 = vector.broadcast %c256_i32_9 : i32 to vector<8x128xi32>
      %23 = arith.cmpi slt, %21, %22 : vector<8x128xi32>
      %24 = vector.shape_cast %23 : vector<8x128xi1> to vector<1x8x128xi1>
      %cst = arith.constant 0.000000e+00 : f32
      %25 = vector.shape_cast %24 : vector<1x8x128xi1> to vector<1x8x128xi1>
      %26 = vector.broadcast %25 : vector<1x8x128xi1> to vector<2x8x128xi1>
      %27 = vector.broadcast %cst : f32 to vector<2x8x128xf32>
      %28 = arith.select %26, %13, %27 : vector<2x8x128xi1>, vector<2x8x128xf32>
      %cst_10 = arith.constant 0.000000e+00 : f32
      %29 = vector.shape_cast %24 : vector<1x8x128xi1> to vector<1x8x128xi1>
      %30 = vector.broadcast %29 : vector<1x8x128xi1> to vector<2x8x128xi1>
      %31 = vector.broadcast %cst_10 : f32 to vector<2x8x128xf32>
      %32 = arith.select %30, %14, %31 : vector<2x8x128xi1>, vector<2x8x128xf32>
      %33 = arith.subf %32, %28 : vector<2x8x128xf32>
      %c0_11 = arith.constant 0 : index
      %c0_12 = arith.constant 0 : index
      %c0_13 = arith.constant 0 : index
      %c0_14 = arith.constant 0 : index
      %34 = vector.load %arg4[%c0_11, %c0_12, %c0_13, %c0_14] : memref<1x3x2x128xf32, #tpu.memory_space<vmem>>, vector<1x1x2x128xf32>
      %35 = vector.shape_cast %34 : vector<1x1x2x128xf32> to vector<2x128xf32>
      %36 = arith.mulf %33, %33 : vector<2x8x128xf32>
      %cst_15 = arith.constant dense<0.000000e+00> : vector<2x128xf32>
      %37 = vector.multi_reduction <add>, %36, %cst_15 [1] : vector<2x8x128xf32> to vector<2x128xf32>
      %38 = arith.addf %35, %37 : vector<2x128xf32>
      %c0_16 = arith.constant 0 : index
      %c0_17 = arith.constant 0 : index
      %c0_18 = arith.constant 0 : index
      %c0_19 = arith.constant 0 : index
      %39 = vector.load %arg4[%c0_16, %c0_17, %c0_18, %c0_19] : memref<1x3x2x128xf32, #tpu.memory_space<vmem>>, vector<1x1x2x128xf32>
      %40 = vector.shape_cast %39 : vector<1x1x2x128xf32> to vector<2x128xf32>
      %41 = vector.shape_cast %38 : vector<2x128xf32> to vector<1x1x2x128xf32>
      tpu.vector_store %arg4[%c0_16, %c0_17, %c0_18, %c0_19], %41 {strides = array<i32>} : memref<1x3x2x128xf32, #tpu.memory_space<vmem>>, vector<1x1x2x128xf32>,
      %c0_20 = arith.constant 0 : index
      %c1 = arith.constant 1 : index
      %c0_21 = arith.constant 0 : index
      %c0_22 = arith.constant 0 : index
      %42 = vector.load %arg4[%c0_20, %c1, %c0_21, %c0_22] : memref<1x3x2x128xf32, #tpu.memory_space<vmem>>, vector<1x1x2x128xf32>
      %43 = vector.shape_cast %42 : vector<1x1x2x128xf32> to vector<2x128xf32>
      %44 = arith.mulf %28, %32 : vector<2x8x128xf32>
      %cst_23 = arith.constant dense<0.000000e+00> : vector<2x128xf32>
      %45 = vector.multi_reduction <add>, %44, %cst_23 [1] : vector<2x8x128xf32> to vector<2x128xf32>
      %46 = arith.addf %43, %45 : vector<2x128xf32>
      %c0_24 = arith.constant 0 : index
      %c1_25 = arith.constant 1 : index
      %c0_26 = arith.constant 0 : index
      %c0_27 = arith.constant 0 : index
      %47 = vector.load %arg4[%c0_24, %c1_25, %c0_26, %c0_27] : memref<1x3x2x128xf32, #tpu.memory_space<vmem>>, vector<1x1x2x128xf32>
      %48 = vector.shape_cast %47 : vector<1x1x2x128xf32> to vector<2x128xf32>
      %49 = vector.shape_cast %46 : vector<2x128xf32> to vector<1x1x2x128xf32>
      tpu.vector_store %arg4[%c0_24, %c1_25, %c0_26, %c0_27], %49 {strides = array<i32>} : memref<1x3x2x128xf32, #tpu.memory_space<vmem>>, vector<1x1x2x128xf32>,
      %c0_28 = arith.constant 0 : index
      %c2 = arith.constant 2 : index
      %c0_29 = arith.constant 0 : index
      %c0_30 = arith.constant 0 : index
      %50 = vector.load %arg4[%c0_28, %c2, %c0_29, %c0_30] : memref<1x3x2x128xf32, #tpu.memory_space<vmem>>, vector<1x1x2x128xf32>
      %51 = vector.shape_cast %50 : vector<1x1x2x128xf32> to vector<2x128xf32>
      %52 = arith.addf %28, %32 : vector<2x8x128xf32>
      %cst_31 = arith.constant dense<0.000000e+00> : vector<2x128xf32>
      %53 = vector.multi_reduction <add>, %52, %cst_31 [1] : vector<2x8x128xf32> to vector<2x128xf32>
      %54 = arith.addf %51, %53 : vector<2x128xf32>
      %c0_32 = arith.constant 0 : index
      %c2_33 = arith.constant 2 : index
      %c0_34 = arith.constant 0 : index
      %c0_35 = arith.constant 0 : index
      %55 = vector.load %arg4[%c0_32, %c2_33, %c0_34, %c0_35] : memref<1x3x2x128xf32, #tpu.memory_space<vmem>>, vector<1x1x2x128xf32>
      %56 = vector.shape_cast %55 : vector<1x1x2x128xf32> to vector<2x128xf32>
      %57 = vector.shape_cast %54 : vector<2x128xf32> to vector<1x1x2x128xf32>
      tpu.vector_store %arg4[%c0_32, %c2_33, %c0_34, %c0_35], %57 {strides = array<i32>} : memref<1x3x2x128xf32, #tpu.memory_space<vmem>>, vector<1x1x2x128xf32>,
    } else {
    }
    return
  }
  func.func @transform_0(%arg0: i32, %arg1: i32) -> (i32, i32, i32) {
    %c1_i32 = arith.constant 1 : i32
    %0 = arith.muli %arg0, %c1_i32 : i32
    %1 = arith.addi %0, %arg1 : i32
    %c0_i32 = arith.constant 0 : i32
    %2 = arith.minsi %1, %c0_i32 : i32
    %c0_i32_0 = arith.constant 0 : i32
    %c0_i32_1 = arith.constant 0 : i32
    %c0_i32_2 = arith.constant 0 : i32
    return %c0_i32_0, %2, %c0_i32_1 : i32, i32, i32
  }
  func.func @transform_1(%arg0: i32, %arg1: i32) -> (i32, i32, i32) {
    %c1_i32 = arith.constant 1 : i32
    %0 = arith.muli %arg0, %c1_i32 : i32
    %1 = arith.addi %0, %arg1 : i32
    %c0_i32 = arith.constant 0 : i32
    %2 = arith.minsi %1, %c0_i32 : i32
    %c0_i32_0 = arith.constant 0 : i32
    %c0_i32_1 = arith.constant 0 : i32
    %c0_i32_2 = arith.constant 0 : i32
    return %c0_i32_0, %2, %c0_i32_1 : i32, i32, i32
  }
  func.func @transform_2(%arg0: i32, %arg1: i32) -> (i32, i32, i32, i32) {
    %c0_i32 = arith.constant 0 : i32
    %c0_i32_0 = arith.constant 0 : i32
    %c0_i32_1 = arith.constant 0 : i32
    %c0_i32_2 = arith.constant 0 : i32
    return %arg0, %c0_i32, %c0_i32_0, %c0_i32_1 : i32, i32, i32, i32
  }
}

</mosaic_0001>

<bundles_post_ra>
// kernel: tpu_custom_call.1
= control target key start
LH: loop header
LB: loop body
LE: loop exit
PB: predicated region body
PF: predicated region fallthrough
CT: control target
= control target key end

     0   :  { %7 = vsyncpa [#allocation3], 0  ;;  %s414_s0 = inlined_call_operand.hbm [shape: f32[2,2,128], index: 0, kind: input, shape index: {}]   ;;  %s415_s1 = inlined_call_operand.hbm [shape: f32[2,8,128], index: 1, kind: input, shape index: {}]   ;;  %s416_s2 = inlined_call_operand.hbm [shape: f32[1,3,2,128], index: 2, kind: output, shape index: {}]  }
   0x1   :  { %8 = vsyncpa [#allocation6], 0 }
   0x2   :  { %9 = vsyncpa [#allocation4], 0 }
   0x3   :  { %20 = vsyncadd [#allocation3], 192  ;;  %s30_s9 = sld [smem:[#allocation0]]   ;;  %s355_s10 = smov [#allocation2]  }
   0x4   :  { %s38_s11 = sshll.u32 %s355_s10, 4  ;;  %s356_s12 = smov 32   ;;  %s39_s11 = int_to_ptr.vmem [resolvable:$true] %s38_s11 }
   0x5   :  { %45 = sst [smem:[#allocation9]] %s356_s12  ;;  %s357_s13 = smov 128  }
   0x6   :  { %47 = sst [smem:[#allocation9 + $0x1]] %s357_s13  ;;  %s358_s14 = smov 1  }
   0x7   :  { %49 = sst [smem:[#allocation9 + $0x2]] %s358_s14  ;;  %s359_s17 = smov 2  }
   0x8   :  { %51 = sst [smem:[#allocation9 + $0x3]] %s356_s12  ;;  %s360_s18 = smov [#allocation3]  }
   0x9   :  { %s289_s15 = sshll.u32 %s30_s9, 26  ;;  %53 = sst [smem:[#allocation9 + $0x4]] %s356_s12 }
   0xa   :  { %s290_s16 = sadd.s32 134217728, %s289_s15  ;;  %55 = sst [smem:[#allocation9 + $0x5]] %s359_s17 }
   0xb   :  { %s361_s19 = smov [#allocation8]   ;;  %s362_s22 = smov [#allocation5]  }
   0xc   :  { %57 = dma.general %s414_s0, 64, %s39_s11, %s360_s18, %s361_s19, [#allocation9], %s290_s16, 0  }
   0xd   :  { %s68_s23 = sshll.u32 %s362_s22, 4  ;;  %s305_s26 = scalar_lea.hbm %s415_s1, 256  ;;  %s69_s23 = int_to_ptr.vmem [resolvable:$true] %s68_s23 }
   0xe   :  { %p306_p0 = scmp.ne.s32.totalorder %s415_s1, %s305_s26  ;;  %p309_p1 = scmp.lt.u32.totalorder %s305_s26, %s415_s1 }
  0x10   :  { %p311_p2 = pnand %p309_p1, %p306_p0 }
  0x12   :  { %314 = shalt.err (!%p311_p2)
}
  0x13   :  { %s315_s3 = scalar_lea.vmem %s69_s23, 256  ;;  %p320_p4 = scmp.lt.s32.totalorder %s69_s23, %s69_s23 }
  0x14   :  { %p316_p3 = scmp.ne.s32.totalorder %s69_s23, %s315_s3  ;;  %p321_p5 = scmp.lt.s32.totalorder %s315_s3, %s315_s3 }
  0x16   :  { %p322_p6 = por %p321_p5, %p320_p4 }
  0x18   :  { %p323_p7 = pnand %p322_p6, %p316_p3 }
  0x1a   :  { %326 = shalt.err (!%p323_p7)
}
  0x1b   :  { %s363_s0 = smov 128   ;;  %s364_s4 = smov 8  }
  0x1c   :  { %74 = dma.hbm_to_vmem [thread:$0]  %s415_s1, 256, %s69_s23, [#allocation6], %s363_s0, %s363_s0, %s364_s4  }
  0x1d   :  { %349 = dma.done.wait [#allocation3], 256  }
  0x1e   :  { %350 = vsyncadd [#allocation3], 4294967040 }
  0x1f   :  { %351 = dma.done.wait [#allocation6], 256  }
  0x20   :  { %352 = vsyncadd [#allocation6], 4294967040  ;;  %v184_v0 = vlaneseq  ;;  %v365_v1 = vmov 0.0   ;;  %v180_v6 = vld [vmem:[#allocation2] sm:$0xff]  ;;  %v181_v7 = vld [vmem:[#allocation2 + $0x8] sm:$0xff]  ;;  %vm218_vm1 = vcmask 1041409  }
  0x21   :  { %94 = vst [vmem:[#allocation7] sm:$0x3] %v365_v1  ;;  %95 = vst [vmem:[#allocation7 + $0x2] sm:$0x3] %v365_v1  ;;  %v182_v8 = vld [vmem:[#allocation5] sm:$0xff]  ;;  %v183_v9 = vld [vmem:[#allocation5 + $0x8] sm:$0xff] }
  0x22   :  { %96 = vst [vmem:[#allocation7 + $0x4] sm:$0x3] %v365_v1  ;;  %v185_v2 = vshrl.u32 %v184_v0, 7  ;;  %v187_v3 = vand.u32 127, %v184_v0  ;;  %s366_s1 = smov [#allocation7]  }
  0x23   :  { %s272_s7 = sshll.u32 %s366_s1, 4  ;;  %s273_s7 = int_to_ptr.vmem [resolvable:$true] %s272_s7 }
  0x24   :  { %v188_v4 = vmul.u32 128, %v185_v2  ;;  %s327_s8 = scalar_lea.vmem %s273_s7, 96  ;;  %p332_p9 = scmp.lt.s32.totalorder %s273_s7, %s273_s7 }
  0x25   :  { %p328_p8 = scmp.ne.s32.totalorder %s273_s7, %s327_s8  ;;  %p333_p10 = scmp.lt.s32.totalorder %s327_s8, %s327_s8 }
  0x26   :  { %v191_v5 = vadd.s32 %v188_v4, %v187_v3 }
  0x27   :  { %p334_p11 = por %p333_p10, %p332_p9 }
  0x28   :  { %vm192_vm0 = vcmp.lt.s32.totalorder %v191_v5, 256  ;;  %v224_v52 = vld [vmem:[#allocation7 + $0x2] sm:$0x3]  ;;  %v201_v58 = vld [vmem:[#allocation7] sm:$0x3] }
  0x29   :  { %v195_v10 = vsel %vm192_vm0, %v180_v6, 0.0  ;;  %v196_v11 = vsel %vm192_vm0, %v181_v7, 0.0  ;;  %v197_v12 = vsel %vm192_vm0, %v182_v8, 0.0  ;;  %v198_v13 = vsel %vm192_vm0, %v183_v9, 0.0  ;;  %v246_v55 = vld [vmem:[#allocation7 + $0x4] sm:$0x3]  ;;  %p335_p12 = pnand %p334_p11, %p328_p8 }
  0x2a   :  { %v199_v14 = vsub.f32 %v197_v12, %v195_v10  ;;  %v200_v15 = vsub.f32 %v198_v13, %v196_v11  ;;  %v225_v16 = vmul.f32 %v197_v12, %v195_v10  ;;  %v226_v17 = vmul.f32 %v198_v13, %v196_v11 }
  0x2b   :  { %v247_v18 = vadd.f32 %v197_v12, %v195_v10  ;;  %v248_v19 = vadd.f32 %v198_v13, %v196_v11 }
  0x2c   :  { %v202_v20 = vmul.f32 %v199_v14, %v199_v14  ;;  %v203_v21 = vmul.f32 %v200_v15, %v200_v15  ;;  %v227_v22 = vrot.slane %v225_v16, 4  ;;  %v233_v23 = vrot.slane %v226_v17, 4 }
  0x2d   :  { %v249_v24 = vrot.slane %v247_v18, 4  ;;  %v255_v25 = vrot.slane %v248_v19, 4 }
  0x2e   :  { %v204_v26 = vrot.slane %v202_v20, 4  ;;  %v210_v27 = vrot.slane %v203_v21, 4  ;;  %v228_v28 = vadd.f32 %v227_v22, %v225_v16  ;;  %v234_v29 = vadd.f32 %v233_v23, %v226_v17 }
  0x2f   :  { %v250_v30 = vadd.f32 %v249_v24, %v247_v18  ;;  %v256_v31 = vadd.f32 %v255_v25, %v248_v19 }
  0x30   :  { %v205_v32 = vadd.f32 %v204_v26, %v202_v20  ;;  %v211_v33 = vadd.f32 %v210_v27, %v203_v21  ;;  %v229_v34 = vrot.slane %v228_v28, 2  ;;  %v235_v35 = vrot.slane %v234_v29, 2 }
  0x31   :  { %v251_v36 = vrot.slane %v250_v30, 2  ;;  %v257_v37 = vrot.slane %v256_v31, 2 }
  0x32   :  { %v206_v38 = vrot.slane %v205_v32, 2  ;;  %v212_v39 = vrot.slane %v211_v33, 2  ;;  %v230_v40 = vadd.f32 %v229_v34, %v228_v28  ;;  %v236_v41 = vadd.f32 %v235_v35, %v234_v29 }
  0x33   :  { %v252_v42 = vadd.f32 %v251_v36, %v250_v30  ;;  %v258_v43 = vadd.f32 %v257_v37, %v256_v31 }
  0x34   :  { %v207_v44 = vadd.f32 %v206_v38, %v205_v32  ;;  %v213_v45 = vadd.f32 %v212_v39, %v211_v33  ;;  %v231_v46 = vrot.slane %v230_v40, 1  ;;  %v237_v47 = vrot.slane %v236_v41, 1 }
  0x35   :  { %v253_v48 = vrot.slane %v252_v42, 1  ;;  %v259_v49 = vrot.slane %v258_v43, 1 }
  0x36   :  { %v208_v50 = vrot.slane %v207_v44, 1  ;;  %v214_v51 = vrot.slane %v213_v45, 1  ;;  %v232_v53 = vadd.f32 %v231_v46, %v230_v40  ;;  %v238_v54 = vadd.f32 %v237_v47, %v236_v41 }
  0x37   :  { %v254_v56 = vadd.f32 %v253_v48, %v252_v42  ;;  %v260_v57 = vadd.f32 %v259_v49, %v258_v43 }
  0x38   :  { %v209_v59 = vadd.f32 %v208_v50, %v207_v44  ;;  %v215_v60 = vadd.f32 %v214_v51, %v213_v45  ;;  %v241_v61 = vsel %vm218_vm1, %v238_v54, %v232_v53 }
  0x39   :  { %v243_v62 = vadd.f32 %v241_v61, %v224_v52  ;;  %v263_v63 = vsel %vm218_vm1, %v260_v57, %v254_v56 }
  0x3a   :  { %v219_v0 = vsel %vm218_vm1, %v215_v60, %v209_v59  ;;  %v265_v1 = vadd.f32 %v263_v63, %v246_v55 }
  0x3b   :  { %v221_v2 = vadd.f32 %v219_v0, %v201_v58  ;;  %244 = vst [vmem:[#allocation7 + $0x2] sm:$0x3] %v243_v62 }
  0x3c   :  { %266 = vst [vmem:[#allocation7 + $0x4] sm:$0x3] %v265_v1 }
  0x3d   :  { %222 = vst [vmem:[#allocation7] sm:$0x3] %v221_v2 }
  0x3e   :  { %338 = shalt.err (!%p335_p12)
}
  0x3f   :  { %s339_s11 = scalar_lea.hbm %s416_s2, 96 }
  0x40   :  { %p340_p13 = scmp.ne.s32.totalorder %s416_s2, %s339_s11  ;;  %p343_p0 = scmp.lt.u32.totalorder %s339_s11, %s416_s2 }
  0x42   :  { %p345_p1 = pnand %p343_p0, %p340_p13 }
  0x44   :  { %348 = shalt.err (!%p345_p1)
}
  0x45   :  { %s367_s16 = smov 32   ;;  %s368_s17 = smov 2  }
  0x46   :  { %278 = dma.vmem_to_hbm [thread:$0]  %s273_s7, 96, %s416_s2, [#allocation4], %s367_s16, %s367_s16, %s368_s17  }
  0x47   :  { %353 = dma.done.wait [#allocation4], 96  }
  0x48   :  { %354 = vsyncadd [#allocation4], 4294967200 }
  0x49   :  { %282 = vsyncpa [#allocation3], 1 }
  0x4a   :  { %283 = vsyncpa [#allocation6], 1 }
  0x4b   :  { %284 = vsyncpa [#allocation4], 1 }

</bundles_post_ra>
